<compile_context>
chip_gen: v7x
topology: tpu7x:2x2x1
jax: 0.10.0
libtpu: 0.0.40
codegen_flags: <defaults>
</compile_context>

<pallas_src>
import jax
import jax.numpy as jnp
from jax.experimental import pallas as pl
from jax.experimental.pallas import tpu as pltpu


def _make_ce_partial_kernel(n_total: int, tile_n: int):
    """Per-tile cross-entropy partial sums; one independent grid step per row tile."""

    def kernel(pred_ref, label_ref, out_ref):
        i = pl.program_id(0)

        logits = pred_ref[...].astype(jnp.float32)            # (TILE, C) f32 compute
        labels = label_ref[...]                               # (TILE, 1) int32
        tn, c = logits.shape

        # Mask rows of the (possibly partial) last tile that lie past the true N.
        row_ids = i * tile_n + jax.lax.broadcasted_iota(jnp.int32, (tn, 1), 0)
        row_valid = row_ids < n_total                          # (TILE, 1) bool

        # Numerically stable log-sum-exp over the class (lane) axis.
        m = jnp.max(logits, axis=-1, keepdims=True)            # (TILE, 1)
        shifted = logits - m                                    # logits dies here
        lse_shifted = jnp.log(
            jnp.sum(jnp.exp(shifted), axis=-1, keepdims=True))  # lse - m

        # Label pick via one-hot compare + lane reduce on `shifted`
        # (no per-row dynamic gather inside a vreg on TPU); the +m cancels below.
        class_ids = jax.lax.broadcasted_iota(jnp.int32, (tn, c), 1)
        picked_shifted = jnp.sum(
            jnp.where(class_ids == labels, shifted, 0.0),
            axis=-1, keepdims=True)                             # picked - m

        # True select => NaN/Inf from garbage padded rows cannot leak through.
        per_sample = jnp.where(row_valid, lse_shifted - picked_shifted, 0.0)
        tile_sum = jnp.sum(per_sample, axis=0, keepdims=True)   # (1, 1)

        # Lane-dense (8,128) partial block: tile sum at [0,0], zeros elsewhere.
        sub = jax.lax.broadcasted_iota(jnp.int32, (8, 128), 0)
        lane = jax.lax.broadcasted_iota(jnp.int32, (8, 128), 1)
        out_ref[...] = jnp.where((sub == 0) & (lane == 0), tile_sum, 0.0)

    return kernel


def superpix_criterion(pred, label, *, target_tile_bytes=None,
                       vmem_limit_bytes=48 << 20):
    """pred: (N, C) logits (any float dtype), label: (N,) int class ids -> scalar f32 loss."""
    n, c = pred.shape
    label2d = label.astype(jnp.int32).reshape(n, 1)
    itemsize = jnp.dtype(pred.dtype).itemsize

    if target_tile_bytes is None:
        # Keep 2x double-buffered native tiles + ~4 live f32-sized (TILE,C)
        # intermediates under ~24 MiB total (v7x-safe; ample headroom on v5e/v6e).
        #   f32: ~4 MiB/tile, bf16: ~2.4 MiB/tile.
        f32_expand = max(1, 4 // itemsize)
        target_tile_bytes = (24 << 20) // (2 + 4 * f32_expand)

    bytes_per_row = max(c, 1) * itemsize
    tile_n = max(8, (int(target_tile_bytes // bytes_per_row) // 8) * 8)
    if tile_n >= n:
        tile_n = n  # single block; block == full array dim is always legal

    num_tiles = pl.cdiv(n, tile_n)
    grid = (num_tiles,)

    cost = pl.CostEstimate(
        flops=6 * n * c,
        transcendentals=n * c + n,
        bytes_accessed=n * c * itemsize + n * 4 + num_tiles * 8 * 128 * 4,
    )

    partials = pl.pallas_call(
        _make_ce_partial_kernel(n, tile_n),
        out_shape=jax.ShapeDtypeStruct((num_tiles * 8, 128), jnp.float32),
        grid_spec=pltpu.PrefetchScalarGridSpec(
            num_scalar_prefetch=0,
            grid=grid,
            in_specs=[
                # If xprof still shows exposed DMA, try pipeline_mode=pl.Buffered(3) here.
                pl.BlockSpec((tile_n, c), lambda i: (i, 0)),
                pl.BlockSpec((tile_n, 1), lambda i: (i, 0)),
            ],
            out_specs=pl.BlockSpec((8, 128), lambda i: (i, 0)),
        ),
        compiler_params=pltpu.CompilerParams(
            dimension_semantics=("parallel",),   # per-tile partials are independent
            vmem_limit_bytes=vmem_limit_bytes,
        ),
        cost_estimate=cost,
    )(pred, label2d)   # native dtype goes in; cast to f32 happens inside the kernel

    return jnp.sum(partials) / jnp.float32(n)   # mean over the true N


def _reference(pred, label):
    logits = pred.astype(jnp.float32)
    logz = jax.scipy.special.logsumexp(logits, axis=-1)
    n = logits.shape[0]
    return jnp.mean(logz - logits[jnp.arange(n), label])


if __name__ == "__main__":
    key = jax.random.PRNGKey(0)

    # --- small case consistent with the module (N samples, C classes) ---
    N, C = 8, 32
    k_pred, k_lab, key = jax.random.split(key, 3)
    pred = jax.random.normal(k_pred, (N, C), dtype=jnp.float32)
    label = jax.random.randint(k_lab, (N,), 0, C, dtype=jnp.int32)

    loss = jax.block_until_ready(superpix_criterion(pred, label))
    ref = _reference(pred, label)
    assert jnp.allclose(loss, ref, atol=1e-5, rtol=1e-5), (loss, ref)

    # --- larger case exercising the grid, "parallel" partials, non-128-multiple C,
    #     and partial-last-tile masking (300 rows, 64-row tiles -> 5 tiles) ---
    N2, C2 = 300, 160
    k_pred2, k_lab2, key = jax.random.split(key, 3)
    pred2 = jax.random.normal(k_pred2, (N2, C2), dtype=jnp.float32)
    label2 = jax.random.randint(k_lab2, (N2,), 0, C2, dtype=jnp.int32)

    loss2 = jax.block_until_ready(
        superpix_criterion(pred2, label2, target_tile_bytes=64 * C2 * 4)
    )
    ref2 = _reference(pred2, label2)
    assert jnp.allclose(loss2, ref2, atol=1e-5, rtol=1e-5), (loss2, ref2)

    # --- bf16 logits: native-dtype DMA, in-kernel f32 compute ---
    pred_bf16 = pred2.astype(jnp.bfloat16)
    loss3 = jax.block_until_ready(
        superpix_criterion(pred_bf16, label2, target_tile_bytes=64 * C2 * 2)
    )
    ref3 = _reference(pred_bf16, label2)
    assert jnp.allclose(loss3, ref3, atol=1e-5, rtol=1e-5), (loss3, ref3)

    # --- default (byte-sized) tiling path on the same data ---
    loss4 = jax.block_until_ready(superpix_criterion(pred2, label2))
    assert jnp.allclose(loss4, ref2, atol=1e-5, rtol=1e-5), (loss4, ref2)

    print("KERNEL_OK")
</pallas_src>

<mosaic_0001>
module attributes {stable_mosaic.version = 11 : i64} {
  func.func @kernel(%arg0: i32, %arg1: memref<8x32xf32, #tpu.memory_space<vmem>>, %arg2: memref<8x1xi32, #tpu.memory_space<vmem>>, %arg3: memref<8x128xf32, #tpu.memory_space<vmem>>) attributes {dimension_semantics = [#tpu.dimension_semantics<parallel>], iteration_bounds = array<i64: 1>, scalar_prefetch = 0 : i64, scratch_operands = 0 : i64, tpu.core_type = #tpu.core_type<tc>, window_params = [{transform_indices = @transform_0, window_bounds = array<i64: 8, 32>}, {transform_indices = @transform_1, window_bounds = array<i64: 8, 1>}, {transform_indices = @transform_2, window_bounds = array<i64: 8, 128>}]} {
    %c0 = arith.constant 0 : index
    %c0_0 = arith.constant 0 : index
    %0 = vector.load %arg1[%c0, %c0_0] : memref<8x32xf32, #tpu.memory_space<vmem>>, vector<8x32xf32>
    %c0_1 = arith.constant 0 : index
    %c0_2 = arith.constant 0 : index
    %1 = vector.load %arg2[%c0_1, %c0_2] : memref<8x1xi32, #tpu.memory_space<vmem>>, vector<8x1xi32>
    %c8_i32 = arith.constant 8 : i32
    %2 = arith.muli %arg0, %c8_i32 : i32
    %3 = tpu.iota {dimensions = array<i32: 0>} : vector<8x1xi32>
    %4 = vector.broadcast %2 : i32 to vector<8x1xi32>
    %5 = arith.addi %4, %3 : vector<8x1xi32>
    %c8_i32_3 = arith.constant 8 : i32
    %6 = vector.broadcast %c8_i32_3 : i32 to vector<8x1xi32>
    %7 = arith.cmpi slt, %5, %6 : vector<8x1xi32>
    %cst = arith.constant dense<0xFF800000> : vector<8xf32>
    %8 = vector.multi_reduction <maximumf>, %0, %cst [1] : vector<8x32xf32> to vector<8xf32>
    %9 = vector.shape_cast %8 : vector<8xf32> to vector<8x1xf32>
    %10 = vector.broadcast %9 : vector<8x1xf32> to vector<8x32xf32>
    %11 = arith.subf %0, %10 : vector<8x32xf32>
    %12 = math.exp %11 : vector<8x32xf32>
    %cst_4 = arith.constant dense<0.000000e+00> : vector<8xf32>
    %13 = vector.multi_reduction <add>, %12, %cst_4 [1] : vector<8x32xf32> to vector<8xf32>
    %14 = vector.shape_cast %13 : vector<8xf32> to vector<8x1xf32>
    %15 = math.log %14 : vector<8x1xf32>
    %16 = tpu.iota {dimensions = array<i32: 1>} : vector<8x32xi32>
    %17 = vector.broadcast %1 : vector<8x1xi32> to vector<8x32xi32>
    %18 = arith.cmpi eq, %16, %17 : vector<8x32xi32>
    %cst_5 = arith.constant 0.000000e+00 : f32
    %19 = vector.broadcast %cst_5 : f32 to vector<8x32xf32>
    %20 = arith.select %18, %11, %19 : vector<8x32xi1>, vector<8x32xf32>
    %cst_6 = arith.constant dense<0.000000e+00> : vector<8xf32>
    %21 = vector.multi_reduction <add>, %20, %cst_6 [1] : vector<8x32xf32> to vector<8xf32>
    %22 = vector.shape_cast %21 : vector<8xf32> to vector<8x1xf32>
    %23 = arith.subf %15, %22 : vector<8x1xf32>
    %cst_7 = arith.constant 0.000000e+00 : f32
    %24 = vector.broadcast %cst_7 : f32 to vector<8x1xf32>
    %25 = arith.select %7, %23, %24 : vector<8x1xi1>, vector<8x1xf32>
    %cst_8 = arith.constant dense<0.000000e+00> : vector<1xf32>
    %26 = vector.multi_reduction <add>, %25, %cst_8 [0] : vector<8x1xf32> to vector<1xf32>
    %27 = vector.shape_cast %26 : vector<1xf32> to vector<1x1xf32>
    %28 = tpu.iota {dimensions = array<i32: 0>} : vector<8x128xi32>
    %29 = tpu.iota {dimensions = array<i32: 1>} : vector<8x128xi32>
    %c0_i32 = arith.constant 0 : i32
    %30 = vector.broadcast %c0_i32 : i32 to vector<8x128xi32>
    %31 = arith.cmpi eq, %28, %30 : vector<8x128xi32>
    %c0_i32_9 = arith.constant 0 : i32
    %32 = vector.broadcast %c0_i32_9 : i32 to vector<8x128xi32>
    %33 = arith.cmpi eq, %29, %32 : vector<8x128xi32>
    %34 = arith.andi %31, %33 : vector<8x128xi1>
    %cst_10 = arith.constant 0.000000e+00 : f32
    %35 = vector.shape_cast %27 : vector<1x1xf32> to vector<1x1xf32>
    %36 = vector.broadcast %35 : vector<1x1xf32> to vector<8x128xf32>
    %37 = vector.broadcast %cst_10 : f32 to vector<8x128xf32>
    %38 = arith.select %34, %36, %37 : vector<8x128xi1>, vector<8x128xf32>
    %c0_11 = arith.constant 0 : index
    %c0_12 = arith.constant 0 : index
    %39 = vector.load %arg3[%c0_11, %c0_12] : memref<8x128xf32, #tpu.memory_space<vmem>>, vector<8x128xf32>
    tpu.vector_store %arg3[%c0_11, %c0_12], %38 {strides = array<i32>} : memref<8x128xf32, #tpu.memory_space<vmem>>, vector<8x128xf32>,
    return
  }
  func.func @transform_0(%arg0: i32) -> (i32, i32) {
    %c0_i32 = arith.constant 0 : i32
    %c0_i32_0 = arith.constant 0 : i32
    return %arg0, %c0_i32 : i32, i32
  }
  func.func @transform_1(%arg0: i32) -> (i32, i32) {
    %c0_i32 = arith.constant 0 : i32
    %c0_i32_0 = arith.constant 0 : i32
    return %arg0, %c0_i32 : i32, i32
  }
  func.func @transform_2(%arg0: i32) -> (i32, i32) {
    %c0_i32 = arith.constant 0 : i32
    %c0_i32_0 = arith.constant 0 : i32
    return %arg0, %c0_i32 : i32, i32
  }
}

</mosaic_0001>

<bundles_post_ra>
// kernel: tpu_custom_call.1
= control target key start
LH: loop header
LB: loop body
LE: loop exit
PB: predicated region body
PF: predicated region fallthrough
CT: control target
= control target key end

     0   :  { %vm20_vm0 = vcmask 261120   ;;  %s138_s0 = inlined_call_operand.vmem [shape: f32[8,32], index: 0, kind: input, shape index: {}]   ;;  %s139_s1 = inlined_call_operand.vmem [shape: s32[8,1], index: 1, kind: input, shape index: {}]   ;;  %s140_s2 = inlined_call_operand.hbm [shape: f32[8,128], index: 2, kind: output, shape index: {}]  }
   0x1   :  { %v12_v0 = vld [vmem:[%s138_s0] sm:$0xff] }
   0x2   :  { %7 = vsyncpa [#allocation3], 0  ;;  %v21_v1 = vsel %vm20_vm0, %v12_v0, -inf  ;;  %v100_v2 = vmov 0   ;;  %v13_v3 = vld [vmem:[%s139_s1] sm:$0xff]  ;;  %v15_v7 = vlaneseq  ;;  %s101_s0 = smov [#allocation2]  }
   0x3   :  { %71 = vset.pattern.permute.xlu0 %v100_v2  ;;  %s61_s1 = sshll.u32 %s101_s0, 4  ;;  %s62_s1 = int_to_ptr.vmem [resolvable:$true] %s61_s1 }
   0x4   :  { %22 = vmax.xlane.f32.xlu0 %v21_v1  ;;  %v33_v8 = vand.u32 127, %v15_v7  ;;  %v16_v21 = vshrl.u32 %v15_v7, 7  ;;  %s76_s13 = scalar_lea.vmem %s62_s1, 128  ;;  %p81_p1 = scmp.lt.s32.totalorder %s62_s1, %s62_s1 }
   0x5   :  { %p77_p0 = scmp.ne.s32.totalorder %s62_s1, %s76_s13  ;;  %p82_p2 = scmp.lt.s32.totalorder %s76_s13, %s76_s13 }
   0x6   :  { %vm50_vm2 = vcmp.eq.s32.totalorder %v16_v21, 0  ;;  %vm51_vm3 = vcmp.eq.s32.totalorder %v33_v8, 0 }
   0x7   :  { %vm52_vm4 = vmand %vm50_vm2, %vm51_vm3  ;;  %p83_p3 = por %p82_p2, %p81_p1 }
   0x9   :  { %p84_p4 = pnand %p83_p3, %p77_p0 }
  0x1a   :  { %35 = vperm.xlu0 %71, %v13_v3  }
  0x91   :  { %v23_v4 = vpop.xlane.xlu0 %22 }
  0x92   :  { %v24_v5 = vsub.f32 %v12_v0, %v23_v4 }
  0x94   :  { %v25_v6 = vmul.f32 1.442695, %v24_v5 }
  0x96   :  { %72 = vpow2.f32 %v25_v6 }
  0x99   :  { %v36_v9 = vpop.permute.xlu0 %35 }
  0x9a   :  { %vm37_vm1 = vcmp.eq.s32.totalorder %v33_v8, %v36_v9 }
  0x9b   :  { %v38_v12 = vsel %vm37_vm1, %v24_v5, 0.0 }
  0x9c   :  { %v39_v13 = vsel %vm20_vm0, %v38_v12, 0.0 }
  0xa0   :  { %v73_v10 = vpop.eup %72 }
  0xa1   :  { %v27_v11 = vsel %vm20_vm0, %v73_v10, 0.0 }
  0xa2   :  { %28 = vadd.xlane.f32.xlu1 %v27_v11 }
  0xa6   :  { %40 = vadd.xlane.f32.xlu1 %v39_v13 }
 0x12f   :  { %v29_v14 = vpop.xlane.xlu1 %28 }
 0x130   :  { %74 = vlog2.f32 %v29_v14 }
 0x133   :  { %v41_v17 = vpop.xlane.xlu1 %40 }
 0x13a   :  { %v75_v15 = vpop.eup %74 }
 0x13b   :  { %v31_v16 = vmul.f32 0.6931472, %v75_v15 }
 0x13d   :  { %v42_v18 = vsub.f32 %v31_v16, %v41_v17 }
 0x13f   :  { %v44_v19 = vrot.slane %v42_v18, 4 }
 0x141   :  { %v45_v20 = vadd.f32 %v44_v19, %v42_v18 }
 0x143   :  { %v46_v22 = vrot.slane %v45_v20, 2 }
 0x145   :  { %v47_v23 = vadd.f32 %v46_v22, %v45_v20 }
 0x147   :  { %v48_v24 = vrot.slane %v47_v23, 1 }
 0x149   :  { %v49_v25 = vadd.f32 %v48_v24, %v47_v23 }
 0x14b   :  { %v53_v26 = vsel %vm52_vm4, %v49_v25, 0.0 }
 0x14c   :  { %54 = vst [vmem:[#allocation2] sm:$0xff] %v53_v26 }
 0x14d   :  { %87 = shalt.err (!%p84_p4)
}
 0x14e   :  { %s88_s16 = scalar_lea.hbm %s140_s2, 128 }
 0x14f   :  { %p89_p5 = scmp.ne.s32.totalorder %s140_s2, %s88_s16  ;;  %p92_p6 = scmp.lt.u32.totalorder %s88_s16, %s140_s2 }
 0x151   :  { %p94_p7 = pnand %p92_p6, %p89_p5 }
 0x153   :  { %97 = shalt.err (!%p94_p7)
}
 0x154   :  { %64 = dma.vmem_to_hbm [thread:$0]  %s62_s1, 128, %s140_s2, [#allocation3]  }
 0x155   :  { %98 = dma.done.wait [#allocation3], 128  }
 0x156   :  { %99 = vsyncadd [#allocation3], 4294967168 }
 0x157   :  { %68 = vsyncpa [#allocation3], 1 }

</bundles_post_ra>
